<compile_context>
chip_gen: v5e
topology: v5e:2x2
jax: 0.10.0
libtpu: 0.0.40
codegen_flags: <defaults>
</compile_context>

<pallas_src>
import functools

import jax
import jax.numpy as jnp
import numpy as np
from jax.experimental import pallas as pl
from jax.experimental.pallas import tpu as pltpu


def _folded_encoder_kernel(q_ref, kv_ref, self_ref, w1s_ref, w1c_ref, b1_ref, o_ref, *, scale):
    """Fused attention (1 query per node over its folded sequence) ->
    relu(self_feats @ W1_self + context @ W1_ctx + b1)."""
    tb, E = q_ref.shape
    S = kv_ref.shape[1]

    # kv-independent half of the output matmul first: the MXU can chew on it while the
    # VPU/XLU/EUP run the attention chain.
    self_b = self_ref[...].astype(jnp.bfloat16)                       # [TB, E]
    acc = jnp.dot(self_b, w1s_ref[...], preferred_element_type=jnp.float32)  # [TB, E] f32

    q = q_ref[...].astype(jnp.bfloat16)                                # [TB, E]
    kv = kv_ref[...]                                                   # [TB, S, E] bf16 (k == v)

    # ---- scores = (q . k) * scale ------------------------------------------------------
    prod = q[:, None, :] * kv                                          # [TB, S, E] bf16
    if (S % 8 == 0) and (E % 128 == 0):
        # E-axis (lane) reduction on the MXU: ~1 vmatmul per 8 rows instead of ~7 XLU ops
        # per vreg; accumulation is f32 inside the MXU.
        ones_e = jnp.ones((E, 1), dtype=jnp.bfloat16)
        s = jnp.dot(prod.reshape(tb * S, E), ones_e,
                    preferred_element_type=jnp.float32).reshape(tb, S, 1)
    else:
        # Fallback lane-reduce for awkward shapes.
        s = jnp.sum(prod, axis=-1, keepdims=True, dtype=jnp.float32)   # [TB, S, 1]
    s = s * scale

    # ---- numerically-stable softmax over S (sublane axis; no lane relayout) -------------
    m = jnp.max(s, axis=1, keepdims=True)                              # [TB, 1, 1]
    p = jnp.exp(s - m)                                                 # [TB, S, 1]
    denom = jnp.sum(p, axis=1, keepdims=True)                          # [TB, 1, 1]
    attn = (p * (1.0 / denom)).astype(jnp.bfloat16)                    # [TB, S, 1]

    # ---- context = attn @ v (v == k): lane-broadcast of attn over E, sublane reduce -----
    ctx = jnp.sum(attn * kv, axis=1, dtype=jnp.float32)                # [TB, E] f32
    # TODO(synk): if bundle dumps show vld/vst spill traffic at large tb, run this attention
    # section over 64-128 row sub-chunks (lax.fori_loop + VMEM scratch) keeping full-tile DMA.

    # ---- second half of the fused output matmul + bias + ReLU ---------------------------
    acc = acc + jnp.dot(ctx.astype(jnp.bfloat16), w1c_ref[...],
                        preferred_element_type=jnp.float32)
    acc = acc + b1_ref[...]
    o_ref[...] = jnp.maximum(acc, 0.0).astype(o_ref.dtype)


def _pick_batch_tile(B, S, E, vmem_budget_bytes, max_tb):
    """Largest 8-aligned batch tile dividing B whose working set (double-buffered explicit
    blocks PLUS in-kernel attention intermediates, incl. lane-padded softmax temps) fits the
    budget. Prefers an even number of grid steps (v7x: two TensorCores)."""
    io_bytes = 2 * (S * E * 2 + 2 * E * 2 + E * 4)          # kv/q/self (bf16) + out (f32), x2 bufs
    inter_bytes = 2 * S * E * 2 + 4 * S * 128 * 4 + 4 * E * 4  # bf16 products + padded f32 temps
    per_row = io_bytes + inter_bytes
    tb = min(B, max_tb, max(1, vmem_budget_bytes // per_row))
    if B >= 16:
        tb = min(tb, B // 2)          # >= 2 grid steps so both v7x TCs get work
    for want_even in (True, False):
        for cand in range((tb // 8) * 8, 0, -8):
            if B % cand == 0 and (not want_even or (B // cand) % 2 == 0):
                return cand
    return B  # tiny / awkward B: single full tile (block == full dim satisfies (8,128) rule)


def folded_encoder_pallas(q, kv, self_feats, w1_self, w1_ctx, b1, *, scale=0.125, tb=None):
    """q/self_feats: [B, E] (bf16 recommended); kv: [B, S, E] bf16 (k == v);
    w1_self / w1_ctx: [E, E] bf16 halves of nn.Linear(2E,E).weight.T; b1: [1, E] f32."""
    B, E = q.shape
    S = kv.shape[1]
    assert kv.shape == (B, S, E)
    assert self_feats.shape == (B, E)
    assert w1_self.shape == (E, E) and w1_ctx.shape == (E, E)
    assert b1.shape == (1, E)

    # Per-generation VMEM sizing (v5e/v6e: 128 MiB, v7x: 64 MiB per TensorCore).
    vmem_cap = 64 * 1024 * 1024
    try:
        info = pltpu.get_tpu_info()
        vmem_cap = int(getattr(info, "vmem_capacity_bytes", vmem_cap))
    except Exception:
        pass
    if vmem_cap <= 64 * 1024 * 1024:
        vmem_limit = 40 * 1024 * 1024     # leave headroom on the 64 MiB part
        max_tb = 512
    else:
        vmem_limit = 96 * 1024 * 1024     # 128 MiB parts: amortize the ~0.35us/step overhead
        max_tb = 2048

    if tb is None:
        tb = _pick_batch_tile(B, S, E, vmem_limit // 2, max_tb)
    assert B % tb == 0, "batch must divide evenly into the chosen tile"
    assert tb % 8 == 0 or tb == B, "batch tile must be 8-aligned or equal to the full batch"

    kernel = functools.partial(_folded_encoder_kernel, scale=scale)

    # TODO(synk): for embed_dim < 128, fold several batch rows into one 128-lane output row
    # (or pad E to 128) so the final store stays lane-dense.
    return pl.pallas_call(
        kernel,
        out_shape=jax.ShapeDtypeStruct((B, E), jnp.float32),
        grid_spec=pltpu.PrefetchScalarGridSpec(
            num_scalar_prefetch=0,
            grid=(B // tb,),
            in_specs=[
                pl.BlockSpec((tb, E), lambda i: (i, 0)),         # q (bf16)
                pl.BlockSpec((tb, S, E), lambda i: (i, 0, 0)),   # k == v, single DMA stream (bf16)
                pl.BlockSpec((tb, E), lambda i: (i, 0)),         # self_feats (bf16)
                pl.BlockSpec((E, E), lambda i: (0, 0)),          # W1.T[:E]  (self half, bf16)
                pl.BlockSpec((E, E), lambda i: (0, 0)),          # W1.T[E:]  (context half, bf16)
                pl.BlockSpec((1, E), lambda i: (0, 0)),          # b1 (f32)
            ],
            out_specs=pl.BlockSpec((tb, E), lambda i: (i, 0)),
        ),
        compiler_params=pltpu.CompilerParams(
            # batch tiles are independent -> shards across TensorCores on v7x,
            # neutral on single-TC v5e/v6e.
            dimension_semantics=("parallel",),
            vmem_limit_bytes=vmem_limit,
        ),
    )(q, kv, self_feats, w1_self, w1_ctx, b1)


def build_node_seq(nodes, folded_seq, seq_len):
    """Host-side replica of the PyTorch index construction: pad each folded sequence with the
    node itself up to seq_len, then reverse."""
    node_seq = []
    for node in np.asarray(nodes):
        seq = list(folded_seq[int(node)])
        while len(seq) < seq_len:
            seq.append(int(node))
        node_seq.append(seq[::-1])
    flat = [item for sublist in node_seq for item in sublist]
    return np.asarray(flat, dtype=np.int32)


def reference_forward(q, kv, self_feats, w1_self, w1_ctx, b1, scale=0.125):
    """Pure-numpy reference mirroring the PyTorch forward (k == v == kv)."""
    s = np.einsum('be,bse->bs', q, kv) * scale
    s = s - s.max(axis=-1, keepdims=True)
    p = np.exp(s)
    attn = p / p.sum(axis=-1, keepdims=True)
    ctx = np.einsum('bs,bse->be', attn, kv)
    out = self_feats @ w1_self + ctx @ w1_ctx + b1
    return np.maximum(out, 0.0)


if __name__ == "__main__":
    # Small, deterministic synthetic setup. embed_dim=128 keeps everything lane-native;
    # batch=16 gives a 2-step grid (exercises the tiling + v7x parallel axis).
    num_nodes = 32
    embed_dim = 128
    seq_len = 8
    batch = 16

    key = jax.random.PRNGKey(0)
    k0, k1, k2, k3 = jax.random.split(key, 4)

    uv2e_weight = np.asarray(jax.random.normal(k0, (num_nodes, embed_dim), jnp.float32)) * 0.1
    feat_table = np.asarray(jax.random.normal(k1, (num_nodes, embed_dim), jnp.float32)) * 0.1
    # nn.Linear(2E, E).weight has shape [E, 2E] (torch layout)
    w1 = np.asarray(jax.random.normal(k2, (embed_dim, 2 * embed_dim), jnp.float32)) / np.sqrt(
        2 * embed_dim)
    b1 = np.asarray(jax.random.normal(k3, (embed_dim,), jnp.float32)) * 0.01

    # Deterministic folded sequences (variable length <= seq_len), as in self.folded_seq.
    folded_seq = {
        n: [(n + j + 1) % num_nodes for j in range((n % seq_len) + 1)]
        for n in range(num_nodes)
    }
    nodes = np.arange(0, 2 * batch, 2, dtype=np.int32)   # 16 distinct nodes

    # ---- host-side glue (index construction + embedding gathers), mirrors torch forward ----
    node_seq = build_node_seq(nodes, folded_seq, seq_len)
    q_f32 = uv2e_weight[nodes]                                              # [B, E]
    kv_f32 = uv2e_weight[node_seq].reshape(batch, seq_len, embed_dim)       # [B, S, E] (k == v)
    self_f32 = feat_table[nodes]                                            # [B, E] (torch .t() folded in)

    # bf16 at the pallas_call boundary halves HBM traffic on all streams; compute stays f32
    # where it matters (MXU accumulation, softmax).
    q = jnp.asarray(q_f32).astype(jnp.bfloat16)
    kv = jnp.asarray(kv_f32).astype(jnp.bfloat16)
    self_feats = jnp.asarray(self_f32).astype(jnp.bfloat16)

    # cat order is [self_feats, folded_feats]: first E input rows of W1.T hit self_feats.
    w1_t = w1.T                                                              # [2E, E]
    w1_self = jnp.asarray(w1_t[:embed_dim]).astype(jnp.bfloat16)             # [E, E]
    w1_ctx = jnp.asarray(w1_t[embed_dim:]).astype(jnp.bfloat16)              # [E, E]
    b1_2d = jnp.asarray(b1[None, :])                                         # [1, E] f32

    out = folded_encoder_pallas(q, kv, self_feats, w1_self, w1_ctx, b1_2d, scale=0.125)
    out = jax.block_until_ready(out)

    # Reference uses the bf16-dequantized inputs so boundary quantization is not a mismatch;
    # remaining deltas are bf16 VPU products / bf16 MXU operands + accumulation order.
    ref = reference_forward(
        np.asarray(q.astype(jnp.float32)),
        np.asarray(kv.astype(jnp.float32)),
        np.asarray(self_feats.astype(jnp.float32)),
        np.asarray(w1_self.astype(jnp.float32)),
        np.asarray(w1_ctx.astype(jnp.float32)),
        b1[None, :],
        scale=0.125,
    )
    np.testing.assert_allclose(np.asarray(out), ref, rtol=2e-2, atol=3e-3)

    print("KERNEL_OK")
</pallas_src>

<mosaic_0001>
module attributes {stable_mosaic.version = 11 : i64} {
  func.func @_folded_encoder_kernel(%arg0: i32, %arg1: memref<8x128xbf16, #tpu.memory_space<vmem>>, %arg2: memref<8x8x128xbf16, #tpu.memory_space<vmem>>, %arg3: memref<8x128xbf16, #tpu.memory_space<vmem>>, %arg4: memref<128x128xbf16, #tpu.memory_space<vmem>>, %arg5: memref<128x128xbf16, #tpu.memory_space<vmem>>, %arg6: memref<1x128xf32, #tpu.memory_space<vmem>>, %arg7: memref<8x128xf32, #tpu.memory_space<vmem>>) attributes {dimension_semantics = [#tpu.dimension_semantics<parallel>], iteration_bounds = array<i64: 2>, scalar_prefetch = 0 : i64, scratch_operands = 0 : i64, tpu.core_type = #tpu.core_type<tc>, window_params = [{transform_indices = @transform_0, window_bounds = array<i64: 8, 128>}, {transform_indices = @transform_1, window_bounds = array<i64: 8, 8, 128>}, {transform_indices = @transform_2, window_bounds = array<i64: 8, 128>}, {pipeline_mode = #tpu.pipeline_mode<synchronous>, transform_indices = @transform_3, window_bounds = array<i64: 128, 128>}, {pipeline_mode = #tpu.pipeline_mode<synchronous>, transform_indices = @transform_4, window_bounds = array<i64: 128, 128>}, {pipeline_mode = #tpu.pipeline_mode<synchronous>, transform_indices = @transform_5, window_bounds = array<i64: 1, 128>}, {transform_indices = @transform_6, window_bounds = array<i64: 8, 128>}]} {
    %c0 = arith.constant 0 : index
    %c0_0 = arith.constant 0 : index
    %0 = vector.load %arg3[%c0, %c0_0] : memref<8x128xbf16, #tpu.memory_space<vmem>>, vector<8x128xbf16>
    %c0_1 = arith.constant 0 : index
    %c0_2 = arith.constant 0 : index
    %1 = vector.load %arg4[%c0_1, %c0_2] : memref<128x128xbf16, #tpu.memory_space<vmem>>, vector<128x128xbf16>
    %cst = arith.constant dense<0.000000e+00> : vector<8x128xf32>
    %2 = tpu.matmul %0, %1, %cst {dimension_numbers = #tpu.dot_dimension_numbers<[1], [0], [0], [1], [0, 0, 1, 1], [], []>} : vector<8x128xbf16>, vector<128x128xbf16>, vector<8x128xf32> -> vector<8x128xf32>
    %c0_3 = arith.constant 0 : index
    %c0_4 = arith.constant 0 : index
    %3 = vector.load %arg1[%c0_3, %c0_4] : memref<8x128xbf16, #tpu.memory_space<vmem>>, vector<8x128xbf16>
    %c0_5 = arith.constant 0 : index
    %c0_6 = arith.constant 0 : index
    %c0_7 = arith.constant 0 : index
    %4 = vector.load %arg2[%c0_5, %c0_6, %c0_7] : memref<8x8x128xbf16, #tpu.memory_space<vmem>>, vector<8x8x128xbf16>
    %5 = vector.shape_cast %3 : vector<8x128xbf16> to vector<8x1x128xbf16>
    %6 = vector.broadcast %5 : vector<8x1x128xbf16> to vector<8x8x128xbf16>
    %7 = arith.mulf %6, %4 : vector<8x8x128xbf16>
    %cst_8 = arith.constant 1.000000e+00 : bf16
    %8 = vector.broadcast %cst_8 : bf16 to vector<128x1xbf16>
    %9 = vector.shape_cast %7 : vector<8x8x128xbf16> to vector<64x128xbf16>
    %cst_9 = arith.constant dense<0.000000e+00> : vector<64x1xf32>
    %10 = tpu.matmul %9, %8, %cst_9 {dimension_numbers = #tpu.dot_dimension_numbers<[1], [0], [0], [1], [0, 0, 1, 1], [], []>} : vector<64x128xbf16>, vector<128x1xbf16>, vector<64x1xf32> -> vector<64x1xf32>
    %11 = vector.shape_cast %10 : vector<64x1xf32> to vector<8x8x1xf32>
    %cst_10 = arith.constant 1.250000e-01 : f32
    %12 = vector.broadcast %cst_10 : f32 to vector<8x8x1xf32>
    %13 = arith.mulf %11, %12 : vector<8x8x1xf32>
    %cst_11 = arith.constant dense<0xFF800000> : vector<8x1xf32>
    %14 = vector.multi_reduction <maximumf>, %13, %cst_11 [1] : vector<8x8x1xf32> to vector<8x1xf32>
    %15 = vector.shape_cast %14 : vector<8x1xf32> to vector<8x1x1xf32>
    %16 = vector.broadcast %15 : vector<8x1x1xf32> to vector<8x8x1xf32>
    %17 = arith.subf %13, %16 : vector<8x8x1xf32>
    %18 = math.exp %17 : vector<8x8x1xf32>
    %cst_12 = arith.constant dense<0.000000e+00> : vector<8x1xf32>
    %19 = vector.multi_reduction <add>, %18, %cst_12 [1] : vector<8x8x1xf32> to vector<8x1xf32>
    %20 = vector.shape_cast %19 : vector<8x1xf32> to vector<8x1x1xf32>
    %cst_13 = arith.constant 1.000000e+00 : f32
    %21 = vector.broadcast %cst_13 : f32 to vector<8x1x1xf32>
    %22 = arith.divf %21, %20 : vector<8x1x1xf32>
    %23 = vector.broadcast %22 : vector<8x1x1xf32> to vector<8x8x1xf32>
    %24 = arith.mulf %18, %23 : vector<8x8x1xf32>
    %25 = arith.truncf %24 : vector<8x8x1xf32> to vector<8x8x1xbf16>
    %26 = vector.broadcast %25 : vector<8x8x1xbf16> to vector<8x8x128xbf16>
    %27 = arith.mulf %26, %4 : vector<8x8x128xbf16>
    %28 = arith.extf %27 : vector<8x8x128xbf16> to vector<8x8x128xf32>
    %cst_14 = arith.constant dense<0.000000e+00> : vector<8x128xf32>
    %29 = vector.multi_reduction <add>, %28, %cst_14 [1] : vector<8x8x128xf32> to vector<8x128xf32>
    %30 = arith.truncf %29 : vector<8x128xf32> to vector<8x128xbf16>
    %c0_15 = arith.constant 0 : index
    %c0_16 = arith.constant 0 : index
    %31 = vector.load %arg5[%c0_15, %c0_16] : memref<128x128xbf16, #tpu.memory_space<vmem>>, vector<128x128xbf16>
    %cst_17 = arith.constant dense<0.000000e+00> : vector<8x128xf32>
    %32 = tpu.matmul %30, %31, %cst_17 {dimension_numbers = #tpu.dot_dimension_numbers<[1], [0], [0], [1], [0, 0, 1, 1], [], []>} : vector<8x128xbf16>, vector<128x128xbf16>, vector<8x128xf32> -> vector<8x128xf32>
    %33 = arith.addf %2, %32 : vector<8x128xf32>
    %c0_18 = arith.constant 0 : index
    %c0_19 = arith.constant 0 : index
    %34 = vector.load %arg6[%c0_18, %c0_19] : memref<1x128xf32, #tpu.memory_space<vmem>>, vector<1x128xf32>
    %35 = vector.broadcast %34 : vector<1x128xf32> to vector<8x128xf32>
    %36 = arith.addf %33, %35 : vector<8x128xf32>
    %cst_20 = arith.constant 0.000000e+00 : f32
    %37 = vector.broadcast %cst_20 : f32 to vector<8x128xf32>
    %38 = arith.maximumf %36, %37 : vector<8x128xf32>
    %c0_21 = arith.constant 0 : index
    %c0_22 = arith.constant 0 : index
    %39 = vector.load %arg7[%c0_21, %c0_22] : memref<8x128xf32, #tpu.memory_space<vmem>>, vector<8x128xf32>
    tpu.vector_store %arg7[%c0_21, %c0_22], %38 {strides = array<i32>} : memref<8x128xf32, #tpu.memory_space<vmem>>, vector<8x128xf32>,
    return
  }
  func.func @transform_0(%arg0: i32) -> (i32, i32) {
    %c0_i32 = arith.constant 0 : i32
    %c0_i32_0 = arith.constant 0 : i32
    return %arg0, %c0_i32 : i32, i32
  }
  func.func @transform_1(%arg0: i32) -> (i32, i32, i32) {
    %c0_i32 = arith.constant 0 : i32
    %c0_i32_0 = arith.constant 0 : i32
    %c0_i32_1 = arith.constant 0 : i32
    return %arg0, %c0_i32, %c0_i32_0 : i32, i32, i32
  }
  func.func @transform_2(%arg0: i32) -> (i32, i32) {
    %c0_i32 = arith.constant 0 : i32
    %c0_i32_0 = arith.constant 0 : i32
    return %arg0, %c0_i32 : i32, i32
  }
  func.func @transform_3(%arg0: i32) -> (i32, i32) {
    %c0_i32 = arith.constant 0 : i32
    %c0_i32_0 = arith.constant 0 : i32
    %c0_i32_1 = arith.constant 0 : i32
    return %c0_i32, %c0_i32_0 : i32, i32
  }
  func.func @transform_4(%arg0: i32) -> (i32, i32) {
    %c0_i32 = arith.constant 0 : i32
    %c0_i32_0 = arith.constant 0 : i32
    %c0_i32_1 = arith.constant 0 : i32
    return %c0_i32, %c0_i32_0 : i32, i32
  }
  func.func @transform_5(%arg0: i32) -> (i32, i32) {
    %c0_i32 = arith.constant 0 : i32
    %c0_i32_0 = arith.constant 0 : i32
    %c0_i32_1 = arith.constant 0 : i32
    return %c0_i32, %c0_i32_0 : i32, i32
  }
  func.func @transform_6(%arg0: i32) -> (i32, i32) {
    %c0_i32 = arith.constant 0 : i32
    %c0_i32_0 = arith.constant 0 : i32
    return %arg0, %c0_i32 : i32, i32
  }
}

</mosaic_0001>

<bundles_post_ra>
// kernel: tpu_custom_call.1
= control target key start
LH: loop header
LB: loop body
LE: loop exit
PB: predicated region body
PF: predicated region fallthrough
CT: control target
= control target key end

     0   :  { %s2296_s0 = inlined_call_operand.hbm [shape: bf16[16,128], index: 0, kind: input, shape index: {}]   ;;  %s2297_s1 = inlined_call_operand.hbm [shape: bf16[16,8,128], index: 1, kind: input, shape index: {}]   ;;  %s2298_s2 = inlined_call_operand.hbm [shape: bf16[16,128], index: 2, kind: input, shape index: {}]   ;;  %s2299_s3 = inlined_call_operand.hbm [shape: bf16[128,128], index: 3, kind: input, shape index: {}]   ;;  %s2300_s4 = inlined_call_operand.hbm [shape: bf16[128,128], index: 4, kind: input, shape index: {}]   ;;  %s2301_s5 = inlined_call_operand.vmem [shape: f32[1,128], index: 5, kind: input, shape index: {}]   ;;  %s2302_s6 = inlined_call_operand.hbm [shape: f32[16,128], index: 6, kind: output, shape index: {}]  }
   0x1   :  { %2312 = sst [smem:[#allocation20_spill]] %s2297_s1 }
   0x2   :  { %2313 = sst [smem:[#allocation21_spill]] %s2299_s3 }
   0x3   :  { %11 = vsyncpa [#allocation3], 0 }
   0x4   :  { %13 = vsyncpa [#allocation3 + $0x1], 0 }
   0x5   :  { %14 = vsyncpa [#allocation6], 0 }
   0x6   :  { %16 = vsyncpa [#allocation6 + $0x1], 0 }
   0x7   :  { %17 = vsyncpa [#allocation9], 0 }
   0x8   :  { %18 = vsyncpa [#allocation4], 0 }
   0x9   :  { %20 = vsyncpa [#allocation4 + $0x1], 0  ;;  %s1852_s21 = smov 0   ;;  %s1854_s22 = smov 0  }
   0xa   :  { %s1856_s23 = smov 0   ;;  %s1858_s24 = smov 0  }
   0xb LB: > { %2314 = sst [smem:[#allocation16_spill]] %s1804_s23  ;;  %s1873_s25 = sadd.s32 4294967295, %s1808_s24   ;;  %s1808_s24 = sphi %s1858_s24, %s2340_s24   ;;  %s1804_s23 = sphi %s1856_s23, %s2342_s23   ;;  %s1800_s22 = sphi %s1854_s22, %s2344_s22   ;;  %s1796_s21 = sphi %s1852_s21, %s2343_s21  }
   0xc   : > { %s1331_s26 = sadd.s32 4294967294, %s1808_s24   ;;  %p46_p0 = scmp.ne.s32.totalorder %s1800_s22, %s1796_s21 }
   0xd   : > { %p2311_p1 = scmp.eq.s32.totalorder %s1873_s25, 0  ;;  %p185_p2 = scmp.eq.s32.totalorder %s1873_s25, 1 }
   0xe   : > { %p191_p3 = scmp.eq.s32.totalorder %s1331_s26, 1  ;;  %p1332_p5 = scmp.ge.s32.totalorder %s1808_s24, 1 }
   0xf   : > { %p1882_p4 = por %p2311_p1, %p46_p0  ;;  %p198_p7 = scmp.lt.s32.totalorder %s1808_s24, 3 }
  0x10   : > { %p1887_p6 = por %p191_p3, %p46_p0  ;;  %s2318_s3 = sld [smem:[#allocation21_spill]] }
  0x11   : > { %p1895_p8 = pnand %p1332_p5, %p198_p7  ;;  %s1810_s9 = smov [#allocation8]  }
  0x12   : > { %s2316_s28 = scalar_select %p1887_p6, 1, 0 }
  0x13   : > { %p1482_p9 = pneg %p1895_p8  ;;  %s211_s10 = sshll.u32 %s1810_s9, 4  ;;  %s212_s10 = int_to_ptr.vmem [resolvable:$true] %s211_s10 }
  0x14   : > { %2317 = sst [smem:[#allocation17_spill]] %s2316_s28  ;;  %s1909_s12 = sadd.s32 1, %s1808_s24  }
  0x15   : > { %p1903_p10 = pnand %p1482_p9, %p2311_p1  ;;  %2321 = sst [smem:[#allocation18_spill]] %s1909_s12 }
  0x16   : > { %s209_s7 = sshll.u32 %s2318_s3, 4  ;;  %s2303_s13 = smov 64   ;;  %s210_s7 = int_to_ptr.hbm [resolvable:$true] %s209_s7 }
  0x17   : > { %s2305_s14 = smov 4   ;;  %s30_s15 = ssub.s32 %s1808_s24, %s1909_s12 }
  0x18   : > { %1485 = dma.hbm_to_vmem [thread:$0]  (!%p1903_p10), %s210_s7, 1024, %s212_s10, [#allocation9], %s2303_s13, %s2303_s13, %s2305_s14  }
  0x19   : > { %s33_s16 = sadd.s32 1, %s1804_s23  ;;  %p31_p12 = scmp.eq.s32.totalorder %s30_s15, 0 }
  0x1a   : > { %p40_p13 = scmp.ne.s32.totalorder %s1804_s23, %s1800_s22  ;;  %p41_p0 = scmp.eq.s32.totalorder %s1808_s24, 0 }
  0x1b   : > { %p1505_p3 = scmp.lt.s32.totalorder %s1808_s24, 2  ;;  %s1933_s19 = sand.u32 1, %s1804_s23  }
  0x1c   : > { %s1924_s17 = scalar_select %p31_p12, %s1804_s23, %s33_s16  }
  0x1d   : > { %p42_p5 = por %p41_p0, %p40_p13  ;;  %p1928_p7 = por %p185_p2, %p40_p13 }
  0x1e   : > { %2322 = sst [smem:[#allocation19_spill]] %s1924_s17  ;;  %s261_s20 = sand.u32 1, %s1808_s24  }
  0x1f   : > { %p1936_p9 = pnand %p1505_p3, %p42_p5  ;;  %s1338_s29 = sshll.u32 %s1933_s19, 5 }
  0x20   : > { %s1422_s30 = sshll.u32 %s1808_s24, 5  ;;  %s2325_s1 = sld [smem:[#allocation20_spill]] }
  0x21   : > { %s265_s15 = scalar_lea.vmem [#allocation5], %s1338_s29  ;;  %s223_s17 = sshll.u32 %s2300_s4, 4  ;;  %s224_s17 = int_to_ptr.hbm [resolvable:$true] %s223_s17 }
  0x22   : > { %s273_s16 = sshll.u32 %s265_s15, 4  ;;  %s1948_s23 = scalar_lea.sflag [#allocation6], %s261_s20  ;;  %s274_s16 = int_to_ptr.vmem [resolvable:$true] %s273_s16 }
  0x23   : > { %p1618_p12 = pneg %p1936_p9 }
  0x26   : > { %s270_s10 = scalar_lea.hbm %s2325_s1, %s1422_s30  ;;  %s1621_s7 = scalar_lea.hbm %s2325_s1, 64 }
  0x27   : > { %s271_s13 = sshll.u32 %s270_s10, 4  ;;  %s272_s13 = int_to_ptr.hbm [resolvable:$true] %s271_s13 }
  0x28   : > { %s1614_s12 = sshra.s32 %s272_s13, 4  ;;  %s1615_s12 = int_to_ptr.hbm [resolvable:$true] %s1614_s12 }
  0x29   : > { %s1616_s28 = scalar_lea.hbm %s1615_s12, 32  ;;  %p1622_p3 = scmp.lt.s32.totalorder %s1615_s12, %s2325_s1 }
  0x2a   : > { %p1617_p2 = scmp.ne.s32.totalorder %s1615_s12, %s1616_s28  ;;  %p1623_p5 = scmp.lt.s32.totalorder %s1621_s7, %s1616_s28 }
  0x2c   : > { %p1619_p13 = pnand %p1618_p12, %p1617_p2  ;;  %p1624_p11 = por %p1623_p5, %p1622_p3 }
  0x2e   : > { %p1620_p0 = pneg %p1619_p13 }
  0x30   : > { %p1625_p1 = pnand %p1624_p11, %p1620_p0 }
  0x32   : > { %1628 = shalt.err (!%p1625_p1)
}
  0x33   : > { %s2326_s3 = smov 4   ;;  %s2327_s14 = smov 64  }
  0x34   : > { %1495 = dma.hbm_to_vmem [thread:$0]  (!%p1936_p9), %s272_s13, 512, %s274_s16, %s1948_s23, %s2327_s14, %s2327_s14, %s2326_s3  }
  0x35   : > { %s1813_s20 = smov [#allocation10]   ;;  %s1336_s28 = sshll.u32 %s1933_s19, 2 }
  0x36   : > { %s225_s15 = sshll.u32 %s1813_s20, 4  ;;  %s1337_s12 = sshll.u32 %s1808_s24, 2  ;;  %s226_s15 = int_to_ptr.vmem [resolvable:$true] %s225_s15 }
  0x37   : > { %1488 = dma.hbm_to_vmem [thread:$0]  (!%p1903_p10), %s224_s17, 1024, %s226_s15, [#allocation9], %s2327_s14, %s2327_s14, %s2326_s3  }
  0x38   : > { %s250_s7 = scalar_lea.hbm %s2296_s0, %s1337_s12  ;;  %s246_s9 = scalar_lea.vmem [#allocation2], %s1336_s28 }
  0x39   : > { %s254_s10 = sshll.u32 %s246_s9, 4  ;;  %s252_s1 = sshll.u32 %s250_s7, 4  ;;  %s255_s10 = int_to_ptr.vmem [resolvable:$true] %s254_s10  ;;  %s253_s1 = int_to_ptr.hbm [resolvable:$true] %s252_s1 }
  0x3a   : > { %s243_s13 = scalar_lea.sflag [#allocation3], %s1933_s19  ;;  %s1674_s16 = sshra.s32 %s253_s1, 4  ;;  %s1675_s16 = int_to_ptr.hbm [resolvable:$true] %s1674_s16 }
  0x3b   : > { %s1676_s20 = scalar_lea.hbm %s1675_s16, 4  ;;  %s1681_s3 = scalar_lea.hbm %s2296_s0, 8 }
  0x3c   : > { %p1677_p1 = scmp.ne.s32.totalorder %s1675_s16, %s1676_s20  ;;  %p1682_p10 = scmp.lt.s32.totalorder %s1675_s16, %s2296_s0 }
  0x3d   : > { %p1683_p13 = scmp.lt.s32.totalorder %s1681_s3, %s1676_s20 }
  0x3e   : > { %p1679_p11 = pnand %p1677_p1, %p1618_p12 }
  0x3f   : > { %p1684_p0 = por %p1683_p13, %p1682_p10 }
  0x40   : > { %p1680_p2 = pneg %p1679_p11 }
  0x42   : > { %p1685_p3 = pnand %p1684_p0, %p1680_p2 }
  0x44   : > { %1688 = shalt.err (!%p1685_p3)
}
  0x45   : > { %1492 = dma.hbm_to_vmem [thread:$0]  (!%p1936_p9), %s253_s1, 64, %s255_s10, %s243_s13  }
  0x46   : > { %s291_s30 = scalar_lea.hbm %s2298_s2, %s1337_s12  ;;  %s287_s7 = scalar_lea.vmem [#allocation7], %s1336_s28 }
  0x47   : > { %s295_s9 = sshll.u32 %s287_s7, 4  ;;  %s293_s11 = sshll.u32 %s291_s30, 4  ;;  %s296_s9 = int_to_ptr.vmem [resolvable:$true] %s295_s9  ;;  %s294_s11 = int_to_ptr.hbm [resolvable:$true] %s293_s11 }
  0x48   : > { %s1704_s17 = sshra.s32 %s294_s11, 4  ;;  %s1711_s1 = scalar_lea.hbm %s2298_s2, 8  ;;  %s1705_s17 = int_to_ptr.hbm [resolvable:$true] %s1704_s17 }
  0x49   : > { %s1706_s16 = scalar_lea.hbm %s1705_s17, 4  ;;  %p1712_p2 = scmp.lt.s32.totalorder %s1705_s17, %s2298_s2 }
  0x4a   : > { %p1707_p5 = scmp.ne.s32.totalorder %s1705_s17, %s1706_s16  ;;  %p1713_p10 = scmp.lt.s32.totalorder %s1711_s1, %s1706_s16 }
  0x4c   : > { %p1709_p1 = pnand %p1707_p5, %p1618_p12  ;;  %p1714_p13 = por %p1713_p10, %p1712_p2 }
  0x4e   : > { %p1710_p11 = pneg %p1709_p1 }
  0x50   : > { %p1715_p0 = pnand %p1714_p13, %p1710_p11 }
  0x52   : > { %1718 = shalt.err (!%p1715_p0)
}
  0x53   : > { %1498 = dma.hbm_to_vmem [thread:$0]  (!%p1936_p9), %s294_s11, 64, %s296_s9, %s1948_s23  }
  0x54   : > { %304 = sbr.rel (%p1895_p8) target bundleno = 627 (0x273), region = 44  ;;  %s2007_s28 = sand.u32 (!%p1895_p8), 1, %s1800_s22  }
  0x55   : > { %s1344_s12 = sshll.u32 (!%p1895_p8), %s2007_s28, 2  ;;  %s307_s14 = scalar_lea.sflag (!%p1895_p8), [#allocation3], %s2007_s28 }
  0x56   : > { %s310_s15 = scalar_lea.vmem (!%p1895_p8), [#allocation2], %s1344_s12 }
  0x59   : > { %1779 = dma.done.wait (%p1882_p4), %s307_s14, 64  }
  0x5a   : > { %1781 = vsyncadd (%p1882_p4), %s307_s14, 4294967232  ;;  %s316_s23 = sand.u32 1, %s1873_s25   ;;  %s1345_s8 = sshll.u32 %s2007_s28, 5 }
  0x5b   : > { %s317_s26 = scalar_lea.sflag [#allocation6], %s316_s23  ;;  %s2017_s19 = scalar_lea.vmem [#allocation5], %s1345_s8 }
  0x5c   : > { %1783 = dma.done.wait (%p1882_p4), %s317_s26, 576  }
  0x5d   : > { %1785 = vsyncadd (%p1882_p4), %s317_s26, 4294966720  ;;  %s2023_s29 = scalar_lea.vmem [#allocation7], %s1344_s12  ;;  %p2328_p8 = scmp.eq.s32.totalorder %s1873_s25, 0 }
  0x5f   : > { %1787 = dma.done.wait (%p2328_p8), [#allocation9], 2048   ;;  %p2329_p9 = pmov %p2328_p8 }
  0x60   : > { %v1814_v0 = vmov 1065369472   ;;  %v399_v1 = vld [vmem:[%s310_s15] sm:$0xf]  ;;  %vm410_vm0 = vcmask 1040384   ;;  %vm419_vm1 = vcmask 1042434  }
  0x61   : > { %1789 = vsyncadd (%p2329_p9), [#allocation9], 4294965248  ;;  %539 = vmatpush.bf16.msra.mxu0 %v1814_v0  ;;  %1458 = vmatpush.bf16.msra.mxu3 %v1814_v0  ;;  %vm415_vm2 = vcmask 1041409   ;;  %v409_v2 = vrot.slane %v399_v1, 3  ;;  %v2036_v3 = vld [vmem:[%s2017_s19] sm:$0xff]   ;;  %vm423_vm3 = vcmask 1043459  }
  0x62   : > { %v2041_v9 = vld [vmem:[%s2017_s19 + $0x10] sm:$0xff]   ;;  %v1441_v12 = vunpack.c.l.bf16 %v2036_v3  ;;  %v1442_v13 = vunpack.c.h.bf16 %v2036_v3  ;;  %v2061_v56 = vld [vmem:[%s2017_s19 + $0x8] sm:$0xff]   ;;  %vm576_vm4 = vcmask 7168   ;;  %s1349_s27 = sshll.u32 %s2007_s28, 3  ;;  %s1419_s30 = sshll.u32 %s1873_s25, 3 }
  0x63   : > { %v413_v4 = vsel %vm410_vm0, %v399_v1, %v409_v2  ;;  %v420_v5 = vsel %vm419_vm1, %v399_v1, %v409_v2  ;;  %v416_v6 = vsel %vm415_vm2, %v399_v1, %v409_v2  ;;  %v424_v14 = vsel %vm423_vm3, %v399_v1, %v409_v2  ;;  %v2068_v2 = vld [vmem:[%s2017_s19 + $0x18] sm:$0xff]   ;;  %s1194_s16 = scalar_lea.hbm %s2302_s6, %s1419_s30  ;;  %s379_s20 = scalar_lea.vmem [#allocation11], %s1349_s27 }
  0x64   : > { %v428_v7 = vunpack.i.h.s16 %v413_v4  ;;  %v1350_v8 = vpack.i.b16 %v413_v4, %v413_v4  ;;  %v422_v10 = vrot.slane %v420_v5, 2  ;;  %v418_v11 = vrot.slane %v416_v6, 1  ;;  %s1196_s3 = sshll.u32 %s379_s20, 4  ;;  %s1198_s1 = sshll.u32 %s1194_s16, 4  ;;  %s1197_s3 = int_to_ptr.vmem [resolvable:$true] %s1196_s3  ;;  %s1199_s1 = int_to_ptr.hbm [resolvable:$true] %s1198_s1 }
  0x65   : > { %540 = vmatpush.bf16.msra.mxu0 %v1814_v0  ;;  %1459 = vmatpush.bf16.msra.mxu3 %v1814_v0  ;;  %v1449_v19 = vunpack.c.l.bf16 %v2041_v9  ;;  %v426_v22 = vrot.slane %v424_v14, 3  ;;  %v1450_v35 = vunpack.c.h.bf16 %v2041_v9  ;;  %v1445_v4 = vunpack.c.l.bf16 %v2061_v56  ;;  %s1184_s25 = scalar_lea.sflag [#allocation4], %s2007_s28  ;;  %s1748_s10 = sshra.s32 %s1199_s1, 4  ;;  %s1749_s10 = int_to_ptr.hbm [resolvable:$true] %s1748_s10 }
  0x66   : > { %v436_v15 = vpack.i.b16 %v428_v7, %v428_v7  ;;  %v443_v16 = vperm.slane %v1350_v8, 0  ;;  %v432_v17 = vunpack.i.h.s16 %v422_v10  ;;  %v1352_v18 = vpack.i.b16 %v422_v10, %v422_v10  ;;  %s1750_s13 = scalar_lea.hbm %s1749_s10, 8  ;;  %s1754_s15 = scalar_lea.hbm %s2302_s6, 16 }
  0x67   : > { %v430_v20 = vunpack.i.h.s16 %v418_v11  ;;  %v1351_v21 = vpack.i.b16 %v418_v11, %v418_v11  ;;  %v434_v29 = vunpack.i.h.s16 %v426_v22  ;;  %v1353_v30 = vpack.i.b16 %v426_v22, %v426_v22  ;;  %p1751_p4 = scmp.ne.s32.totalorder %s1749_s10, %s1750_s13  ;;  %p1755_p5 = scmp.lt.s32.totalorder %s1749_s10, %s2302_s6 }
  0x68   : > { %v444_v23 = vperm.slane %v436_v15, 0  ;;  %v452_v24 = vpack.i.b16 %v443_v16, %v443_v16  ;;  %v440_v25 = vpack.i.b16 %v432_v17, %v432_v17  ;;  %v447_v26 = vperm.slane %v1352_v18, 0  ;;  %p1756_p1 = scmp.lt.s32.totalorder %s1754_s15, %s1750_s13 }
  0x69   : > { %541 = vmatpush.bf16.msra.mxu0 %v1814_v0  ;;  %1460 = vmatpush.bf16.msra.mxu3 %v1814_v0  ;;  %v438_v27 = vpack.i.b16 %v430_v20, %v430_v20  ;;  %v445_v28 = vperm.slane %v1351_v21, 0  ;;  %v442_v37 = vpack.i.b16 %v434_v29, %v434_v29  ;;  %v449_v38 = vperm.slane %v1353_v30, 0  ;;  %p1752_p12 = pnand %p1751_p4, %p1928_p7 }
  0x6a   : > { %v454_v31 = vperm.slane %v452_v24, 0  ;;  %v456_v32 = vpack.i.b16 %v444_v23, %v444_v23  ;;  %v448_v33 = vperm.slane %v440_v25, 0  ;;  %v468_v34 = vpack.i.b16 %v447_v26, %v447_v26  ;;  %p1757_p11 = por %p1756_p1, %p1755_p5 }
  0x6b   : > { %v446_v36 = vperm.slane %v438_v27, 0  ;;  %v460_v43 = vpack.i.b16 %v445_v28, %v445_v28  ;;  %v450_v45 = vperm.slane %v442_v37, 0  ;;  %v476_v46 = vpack.i.b16 %v449_v38, %v449_v38  ;;  %p1753_p3 = pneg %p1752_p12 }
  0x6c   : > { %v458_v39 = vperm.slane %v456_v32, 0  ;;  %v483_v40 = vunpack.c.l.bf16 %v454_v31  ;;  %v470_v41 = vperm.slane %v468_v34, 0  ;;  %v472_v42 = vpack.i.b16 %v448_v33, %v448_v33 }
  0x6d   : > { %542 = vmatpush.bf16.msra.mxu0 %v1814_v0  ;;  %1461 = vmatpush.bf16.msra.mxu3 %v1814_v0  ;;  %v464_v44 = vpack.i.b16 %v446_v36, %v446_v36  ;;  %v480_v51 = vpack.i.b16 %v450_v45, %v450_v45  ;;  %v462_v57 = vperm.slane %v460_v43, 0  ;;  %v478_v59 = vperm.slane %v476_v46, 0  ;;  %p1758_p2 = pnand %p1757_p11, %p1753_p3 }
  0x6e   : > { %v484_v47 = vunpack.c.l.bf16 %v458_v39  ;;  %v499_v48 = vmul.f32 %v1441_v12, %v483_v40  ;;  %v474_v49 = vperm.slane %v472_v42, 0  ;;  %v487_v50 = vunpack.c.l.bf16 %v470_v41 }
  0x6f   : > { %v466_v58 = vperm.slane %v464_v44, 0  ;;  %v482_v60 = vperm.slane %v480_v51, 0  ;;  %v1446_v8 = vunpack.c.h.bf16 %v2061_v56  ;;  %v485_v10 = vunpack.c.l.bf16 %v462_v57 }
  0x70   : > { %v500_v52 = vmul.f32 %v1442_v13, %v484_v47  ;;  %v507_v53 = vpack.c.bf16 %v499_v48, %v499_v48  ;;  %v488_v54 = vunpack.c.l.bf16 %v474_v49  ;;  %v503_v55 = vmul.f32 %v1449_v19, %v487_v50 }
  0x71   : > { %543 = vmatpush.bf16.msra.mxu0 %v1814_v0  ;;  %1462 = vmatpush.bf16.msra.mxu3 %v1814_v0  ;;  %v486_v11 = vunpack.c.l.bf16 %v466_v58  ;;  %v1453_v14 = vunpack.c.l.bf16 %v2068_v2  ;;  %v1454_v15 = vunpack.c.h.bf16 %v2068_v2  ;;  %v489_v18 = vunpack.c.l.bf16 %v478_v59 }
  0x72   : > { %v508_v61 = vpack.c.bf16 %v500_v52, %v500_v52  ;;  %v523_v62 = vunpack.c.l.b16 %v507_v53  ;;  %v504_v63 = vmul.f32 %v1450_v35, %v488_v54  ;;  %v511_v1 = vpack.c.bf16 %v503_v55, %v503_v55 }
  0x73   : > { %v490_v20 = vunpack.c.l.bf16 %v482_v60  ;;  %v501_v22 = vmul.f32 %v1445_v4, %v485_v10  ;;  %v502_v23 = vmul.f32 %v1446_v8, %v486_v11  ;;  %v505_v24 = vmul.f32 %v1453_v14, %v489_v18 }
  0x74   : > { %v524_v5 = vunpack.c.l.b16 %v508_v61  ;;  %v512_v6 = vpack.c.bf16 %v504_v63, %v504_v63  ;;  %v527_v7 = vunpack.c.l.b16 %v511_v1 }
  0x75   : > { %544 = vmatpush.bf16.msra.mxu0 %v1814_v0  ;;  %1463 = vmatpush.bf16.msra.mxu3 %v1814_v0  ;;  %v506_v25 = vmul.f32 %v1454_v15, %v490_v20  ;;  %v510_v26 = vpack.c.bf16 %v502_v23, %v502_v23  ;;  %v513_v27 = vpack.c.bf16 %v505_v24, %v505_v24 }
  0x76   : > { %v531_v16 = vpack.c.b16 %v524_v5, %v523_v62  ;;  %v528_v17 = vunpack.c.l.b16 %v512_v6 }
  0x77   : > { %v514_v28 = vpack.c.bf16 %v506_v25, %v506_v25  ;;  %v526_v30 = vunpack.c.l.b16 %v510_v26  ;;  %v529_v31 = vunpack.c.l.b16 %v513_v27 }
  0x78   : > { %v533_v21 = vpack.c.b16 %v528_v17, %v527_v7 }
  0x79   : > { %545 = vmatpush.bf16.msra.mxu0 %v1814_v0  ;;  %1464 = vmatpush.bf16.msra.mxu3 %v1814_v0  ;;  %v530_v32 = vunpack.c.l.b16 %v514_v28 }
  0x7b   : > { %v534_v34 = vpack.c.b16 %v530_v32, %v529_v31 }
  0x7d   : > { %546 = vmatpush.bf16.msra.mxu0 %v1814_v0  ;;  %1465 = vmatpush.bf16.msra.mxu3 %v1814_v0  ;;  %v509_v0 = vpack.c.bf16 %v501_v22, %v501_v22 }
  0x7f   : > { %v525_v29 = vunpack.c.l.b16 %v509_v0 }
  0x80   : > { %547 = vmatmul.bf16.vlgmr.msra.gmra.mxu0 %v531_v16  ;;  %557 = vmatmul.bf16.vlgmr.msra.gmra.mxu3 %v533_v21 }
  0x81   : > { %v532_v33 = vpack.c.b16 %v526_v30, %v525_v29 }
  0x90   : > { %552 = vmatmul.bf16.gmra.mxu0 %v532_v33  ;;  %562 = vmatmul.bf16.gmra.mxu3 %v534_v34 }
  0xfd   : > { %v548_v36 = vpop.f32.mrf.mxu0 }
  0xfe   : > { %v568_v37 = vmul.f32 0.125, %v548_v36 }
 0x100   : > { %v577_v38 = vsel %vm576_vm4, %v568_v37, -inf }
 0x101   : > { %v578_v39 = vrot.slane %v577_v38, 4 }
 0x103   : > { %v579_v40 = vmax.f32 %v577_v38, %v578_v39  ;;  %v558_v41 = vpop.f32.mrf.mxu3 }
 0x104   : > { %v572_v43 = vmul.f32 0.125, %v558_v41 }
 0x105   : > { %v580_v42 = vrot.slane %v579_v40, 2  ;;  %v550_v44 = vpop.f32.mrf.mxu0 }
 0x106   : > { %v569_v45 = vmul.f32 0.125, %v550_v44  ;;  %v605_v47 = vsel %vm576_vm4, %v572_v43, -inf }
 0x107   : > { %v581_v46 = vmax.f32 %v579_v40, %v580_v42  ;;  %v606_v48 = vrot.slane %v605_v47, 4 }
 0x108   : > { %v584_v49 = vsel %vm576_vm4, %v569_v45, -inf }
 0x109   : > { %v582_v50 = vrot.slane %v581_v46, 1  ;;  %v585_v51 = vrot.slane %v584_v49, 4  ;;  %v607_v52 = vmax.f32 %v605_v47, %v606_v48 }
 0x10b   : > { %v583_v53 = vmax.f32 %v581_v46, %v582_v50  ;;  %v586_v54 = vmax.f32 %v584_v49, %v585_v51  ;;  %v608_v55 = vrot.slane %v607_v52, 2  ;;  %v560_v57 = vpop.f32.mrf.mxu3 }
 0x10c   : > { %v573_v60 = vmul.f32 0.125, %v560_v57 }
 0x10d   : > { %v633_v58 = vsub.f32 %v568_v37, %v583_v53  ;;  %v587_v59 = vrot.slane %v586_v54, 2  ;;  %v553_v61 = vpop.f32.mrf.mxu0  ;;  %v609_v62 = vmax.f32 %v607_v52, %v608_v55  ;;  %v1815_v52 = vmov 0  }
 0x10e   : > { %v570_v63 = vmul.f32 0.125, %v553_v61  ;;  %v612_v6 = vsel %vm576_vm4, %v573_v60, -inf  ;;  %1548 = vset.pattern.permute.xlu0 %v1815_v52  ;;  %1549 = vset.pattern.permute.xlu2 %v1815_v52 }
 0x10f   : > { %v641_v1 = vmul.f32 1.442695, %v633_v58  ;;  %v588_v5 = vmax.f32 %v586_v54, %v587_v59  ;;  %v610_v7 = vrot.slane %v609_v62, 1  ;;  %v613_v10 = vrot.slane %v612_v6, 4  ;;  %1550 = vset.pattern.permute.xlu1 %v1815_v52 }
 0x110   : > { %v591_v11 = vsel %vm576_vm4, %v570_v63, -inf }
 0x111   : > { %1552 = vpow2.f32 %v641_v1  ;;  %v589_v16 = vrot.slane %v588_v5, 1  ;;  %v592_v17 = vrot.slane %v591_v11, 4  ;;  %v611_v18 = vmax.f32 %v609_v62, %v610_v7 }
 0x112   : > { %v614_v20 = vmax.f32 %v612_v6, %v613_v10 }
 0x113   : > { %v590_v21 = vmax.f32 %v588_v5, %v589_v16  ;;  %v593_v22 = vmax.f32 %v591_v11, %v592_v17  ;;  %v637_v23 = vsub.f32 %v572_v43, %v611_v18  ;;  %v563_v25 = vpop.f32.mrf.mxu3 }
 0x114   : > { %v615_v24 = vrot.slane %v614_v20, 2  ;;  %v2089_v27 = vmul.f32 0.125, %v563_v25 }
 0x115   : > { %v634_v0 = vsub.f32 %v569_v45, %v590_v21  ;;  %v594_v26 = vrot.slane %v593_v22, 2  ;;  %v555_v28 = vpop.f32.mrf.mxu0  ;;  %v649_v29 = vmul.f32 1.442695, %v637_v23 }
 0x116   : > { %v616_v30 = vmax.f32 %v614_v20, %v615_v24  ;;  %v2091_v31 = vmul.f32 0.125, %v555_v28  ;;  %v619_v36 = vsel %vm576_vm4, %v2089_v27, -inf }
 0x117   : > { %v2093_v32 = vpop.eup %1552  ;;  %v643_v33 = vmul.f32 1.442695, %v634_v0  ;;  %v595_v34 = vmax.f32 %v593_v22, %v594_v26  ;;  %1554 = vpow2.f32 %v649_v29  ;;  %v620_v39 = vrot.slane %v619_v36, 4 }
 0x118   : > { %v657_v37 = vsel %vm576_vm4, %v2093_v32, 0.0  ;;  %v617_v38 = vrot.slane %v616_v30, 1  ;;  %v598_v42 = vsel %vm576_vm4, %v2091_v31, -inf }
 0x119   : > { %v658_v40 = vrot.slane %v657_v37, 4  ;;  %1556 = vpow2.f32 %v643_v33  ;;  %v596_v41 = vrot.slane %v595_v34, 1  ;;  %v621_v44 = vmax.f32 %v619_v36, %v620_v39 }
 0x11a   : > { %v618_v43 = vmax.f32 %v616_v30, %v617_v38  ;;  %v599_v45 = vrot.slane %v598_v42, 4 }
 0x11b   : > { %v659_v46 = vadd.f32 %v658_v40, %v657_v37  ;;  %v597_v47 = vmax.f32 %v595_v34, %v596_v41  ;;  %v622_v49 = vrot.slane %v621_v44, 2  ;;  %v565_v51 = vpop.f32.mrf.mxu3 }
 0x11c   : > { %v638_v48 = vsub.f32 %v573_v60, %v618_v43  ;;  %v600_v50 = vmax.f32 %v598_v42, %v599_v45  ;;  %v2101_v55 = vmul.f32 0.125, %v565_v51 }
 0x11d   : > { %v660_v53 = vrot.slane %v659_v46, 2  ;;  %v635_v54 = vsub.f32 %v570_v63, %v597_v47  ;;  %v2103_v57 = vpop.eup %1554  ;;  %v623_v59 = vmax.f32 %v621_v44, %v622_v49 }
 0x11e   : > { %v651_v58 = vmul.f32 1.442695, %v638_v48  ;;  %v601_v61 = vrot.slane %v600_v50, 2  ;;  %v685_v60 = vsel %vm576_vm4, %v2103_v57, 0.0  ;;  %v626_v6 = vsel %vm576_vm4, %v2101_v55, -inf }
 0x11f   : > { %v2105_v62 = vpop.eup %1556  ;;  %v661_v1 = vadd.f32 %v660_v53, %v659_v46  ;;  %v645_v5 = vmul.f32 1.442695, %v635_v54  ;;  %v686_v7 = vrot.slane %v685_v60, 4  ;;  %v624_v10 = vrot.slane %v623_v59, 1 }
 0x120   : > { %v664_v63 = vsel %vm576_vm4, %v2105_v62, 0.0  ;;  %1558 = vpow2.f32 %v651_v58  ;;  %v602_v17 = vmax.f32 %v600_v50, %v601_v61  ;;  %v627_v21 = vrot.slane %v626_v6, 4 }
 0x121   : > { %v662_v11 = vrot.slane %v661_v1, 1  ;;  %v665_v16 = vrot.slane %v664_v63, 4  ;;  %1560 = vpow2.f32 %v645_v5  ;;  %v687_v18 = vadd.f32 %v686_v7, %v685_v60 }
 0x122   : > { %v625_v20 = vmax.f32 %v623_v59, %v624_v10  ;;  %v603_v24 = vrot.slane %v602_v17, 1  ;;  %v628_v26 = vmax.f32 %v626_v6, %v627_v21 }
 0x123   : > { %v2113_v22 = vadd.f32 %v662_v11, %v661_v1  ;;  %v666_v23 = vadd.f32 %v665_v16, %v664_v63  ;;  %v688_v25 = vrot.slane %v687_v18, 2 }
 0x124   : > { %v639_v0 = vsub.f32 %v2089_v27, %v625_v20  ;;  %v604_v29 = vmax.f32 %v602_v17, %v603_v24  ;;  %v629_v36 = vrot.slane %v628_v26, 2 }
 0x125   : > { %1562 = vrcp.f32 %v2113_v22  ;;  %v667_v28 = vrot.slane %v666_v23, 2  ;;  %v689_v33 = vadd.f32 %v688_v25, %v687_v18  ;;  %v722_v49 = vand.u32 2147483647, %v2113_v22 }
 0x126   : > { %v2117_v30 = vpop.eup %1558  ;;  %v653_v34 = vmul.f32 1.442695, %v639_v0  ;;  %v636_v40 = vsub.f32 %v2091_v31, %v604_v29  ;;  %v630_v46 = vmax.f32 %v628_v26, %v629_v36  ;;  %v724_v50 = vand.u32 2147483648, %v2113_v22 }
 0x127   : > { %v2119_v37 = vpop.eup %1560  ;;  %v668_v38 = vadd.f32 %v667_v28, %v666_v23  ;;  %v692_v39 = vsel %vm576_vm4, %v2117_v30, 0.0  ;;  %v690_v41 = vrot.slane %v689_v33, 1  ;;  %vm718_vm5 = vweird.f32 %v2113_v22 }
 0x128   : > { %v693_v27 = vrot.slane %v692_v39, 4  ;;  %v671_v42 = vsel %vm576_vm4, %v2119_v37, 0.0  ;;  %1564 = vpow2.f32 %v653_v34  ;;  %v647_v45 = vmul.f32 1.442695, %v636_v40 }
 0x129   : > { %v669_v43 = vrot.slane %v668_v38, 1  ;;  %v672_v44 = vrot.slane %v671_v42, 4  ;;  %v2126_v47 = vadd.f32 %v690_v41, %v689_v33  ;;  %v631_v53 = vrot.slane %v630_v46, 1 }
 0x12a   : > { %v694_v48 = vadd.f32 %v693_v27, %v692_v39  ;;  %1566 = vpow2.f32 %v647_v45  ;;  %vm2138_vm6 = vcmp.eq.f32.partialorder %v722_v49, 8.507059e+37  ;;  %v725_v11 = vor.u32 1.1754944e-38, %v724_v50 }
 0x12b   : > { %v1563_v51 = vpop.eup %1562  ;;  %v2130_v52 = vadd.f32 %v669_v43, %v668_v38  ;;  %v673_v31 = vadd.f32 %v672_v44, %v671_v42  ;;  %1568 = vrcp.f32 %v2126_v47  ;;  %v632_v61 = vmax.f32 %v630_v46, %v631_v53 }
 0x12c   : > { %v695_v54 = vrot.slane %v694_v48, 2  ;;  %v714_v58 = vmul.f32 %v1563_v51, %v2113_v22  ;;  %vm719_vm7 = vweird.f32 %v1563_v51  ;;  %vm778_vm8 = vweird.f32 %v2126_v47 }
 0x12d   : > { %1570 = vrcp.f32 %v2130_v52  ;;  %v674_v59 = vrot.slane %v673_v31, 2  ;;  %v640_v10 = vsub.f32 %v2101_v55, %v632_v61  ;;  %v782_v24 = vand.u32 2147483647, %v2126_v47  ;;  %vm720_vm9 = vmor %vm718_vm5, %vm719_vm7 }
 0x12e   : > { %v2135_v1 = vpop.eup %1564  ;;  %v696_v60 = vadd.f32 %v695_v54, %v694_v48  ;;  %v715_v5 = vsub.f32 1.0, %v714_v58  ;;  %v784_v25 = vand.u32 2147483648, %v2126_v47  ;;  %vm733_vm10 = vweird.f32 %v2130_v52 }
 0x12f   : > { %v675_v7 = vadd.f32 %v674_v59, %v673_v31  ;;  %v699_v63 = vsel %vm576_vm4, %v2135_v1, 0.0  ;;  %v655_v23 = vmul.f32 1.442695, %v640_v10  ;;  %v737_v41 = vand.u32 2147483647, %v2130_v52 }
 0x130   : > { %v697_v16 = vrot.slane %v696_v60, 1  ;;  %v700_v17 = vrot.slane %v699_v63, 4  ;;  %v716_v18 = vmul.f32 %v1563_v51, %v715_v5  ;;  %v2145_v20 = vpop.eup %1566  ;;  %vm2167_vm11 = vcmp.eq.f32.partialorder %v782_v24, 8.507059e+37 }
 0x131   : > { %v676_v21 = vrot.slane %v675_v7, 1  ;;  %v1569_v0 = vpop.eup %1568  ;;  %v678_v55 = vsel %vm576_vm4, %v2145_v20, 0.0  ;;  %1572 = vpow2.f32 %v655_v23  ;;  %v739_v50 = vand.u32 2147483648, %v2130_v52 }
 0x132   : > { %v2150_v26 = vadd.f32 %v697_v16, %v696_v60  ;;  %v701_v28 = vadd.f32 %v700_v17, %v699_v63  ;;  %v717_v29 = vadd.f32 %v1563_v51, %v716_v18  ;;  %v679_v36 = vrot.slane %v678_v55, 4 }
 0x133   : > { %v1571_v33 = vpop.eup %1570  ;;  %v2154_v34 = vadd.f32 %v676_v21, %v675_v7  ;;  %v774_v38 = vmul.f32 %v1569_v0, %v2126_v47  ;;  %vm779_vm12 = vweird.f32 %v1569_v0  ;;  %v785_v53 = vor.u32 1.1754944e-38, %v784_v25 }
 0x134   : > { %1574 = vrcp.f32 %v2150_v26  ;;  %v702_v39 = vrot.slane %v701_v28, 2  ;;  %v721_v40 = vsel %vm720_vm9, %v1563_v51, %v717_v29  ;;  %v680_v27 = vadd.f32 %v679_v36, %v678_v55  ;;  %vm780_vm15 = vmor %vm778_vm8, %vm779_vm12 }
 0x135   : > { %1576 = vrcp.f32 %v2154_v34  ;;  %v726_v42 = vsel %vm2138_vm6, %v725_v11, %v721_v40  ;;  %v775_v43 = vsub.f32 1.0, %v774_v38  ;;  %v729_v46 = vmul.f32 %v1571_v33, %v2130_v52 }
 0x136   : > { %v703_v44 = vadd.f32 %v702_v39, %v701_v28  ;;  %v833_v22 = vmul.f32 %v2093_v32, %v726_v42  ;;  %v681_v48 = vrot.slane %v680_v27, 2  ;;  %vm734_vm13 = vweird.f32 %v1571_v33 }
 0x137   : > { %v776_v49 = vmul.f32 %v1569_v0, %v775_v43  ;;  %v730_v54 = vsub.f32 1.0, %v729_v46  ;;  %v2173_v58 = vpop.eup %1572  ;;  %vm2175_vm14 = vcmp.eq.f32.partialorder %v737_v41, 8.507059e+37  ;;  %v740_v63 = vor.u32 1.1754944e-38, %v739_v50  ;;  %vm735_vm0 = vmor %vm733_vm10, %vm734_vm13 }
 0x138   : > { %v704_v51 = vrot.slane %v703_v44, 1  ;;  %v841_v31 = vpack.c.bf16 %v833_v22, %v833_v22  ;;  %v682_v59 = vadd.f32 %v681_v48, %v680_v27  ;;  %v706_v6 = vsel %vm576_vm4, %v2173_v58, 0.0 }
 0x139   : > { %v777_v61 = vadd.f32 %v1569_v0, %v776_v49  ;;  %v731_v7 = vmul.f32 %v1571_v33, %v730_v54  ;;  %v707_v16 = vrot.slane %v706_v6, 4  ;;  %v797_v24 = vand.u32 2147483647, %v2150_v26 }
 0x13a   : > { %v1575_v60 = vpop.eup %1574  ;;  %v2179_v5 = vadd.f32 %v704_v51, %v703_v44  ;;  %851 = vperm.xlu0 %1548, %v841_v31   ;;  %v683_v11 = vrot.slane %v682_v59, 1  ;;  %vm793_vm4 = vweird.f32 %v2150_v26  ;;  %v799_v29 = vand.u32 2147483648, %v2150_v26 }
 0x13b   : > { %v1577_v10 = vpop.eup %1576  ;;  %v781_v17 = vsel %vm780_vm15, %v1569_v0, %v777_v61  ;;  %v789_v18 = vmul.f32 %v1575_v60, %v2150_v26  ;;  %v732_v23 = vadd.f32 %v1571_v33, %v731_v7  ;;  %v708_v47 = vadd.f32 %v707_v16, %v706_v6 }
 0x13c   : > { %1578 = vrcp.f32 %v2179_v5  ;;  %v786_v21 = vsel %vm2167_vm11, %v785_v53, %v781_v17  ;;  %v2191_v25 = vadd.f32 %v683_v11, %v682_v59  ;;  %v744_v36 = vmul.f32 %v1577_v10, %v2154_v34 }
 0x13d   : > { %v837_v28 = vmul.f32 %v2103_v57, %v786_v21  ;;  %v790_v0 = vsub.f32 1.0, %v789_v18  ;;  %v736_v55 = vsel %vm735_vm0, %v1571_v33, %v732_v23  ;;  %v709_v38 = vrot.slane %v708_v47, 2 }
 0x13e   : > { %1580 = vrcp.f32 %v2191_v25  ;;  %v741_v40 = vsel %vm2175_vm14, %v740_v63, %v736_v55  ;;  %vm794_vm5 = vweird.f32 %v1575_v60  ;;  %v745_v52 = vsub.f32 1.0, %v744_v36 }
 0x13f   : > { %v845_v39 = vpack.c.bf16 %v837_v28, %v837_v28  ;;  %v834_v57 = vmul.f32 %v2105_v62, %v741_v40  ;;  %v791_v41 = vmul.f32 %v1575_v60, %v790_v0  ;;  %v710_v27 = vadd.f32 %v709_v38, %v708_v47  ;;  %vm795_vm8 = vmor %vm793_vm4, %vm794_vm5 }
 0x140   : > { %vm2204_vm6 = vcmp.eq.f32.partialorder %v797_v24, 8.507059e+37  ;;  %v752_v42 = vand.u32 2147483647, %v2154_v34  ;;  %v754_v43 = vand.u32 2147483648, %v2154_v34  ;;  %v746_v46 = vmul.f32 %v1577_v10, %v745_v52 }
 0x141   : > { %887 = vperm.xlu2 %1549, %v845_v39   ;;  %v842_v22 = vpack.c.bf16 %v834_v57, %v834_v57  ;;  %v792_v45 = vadd.f32 %v1575_v60, %v791_v41  ;;  %vm749_vm7 = vweird.f32 %v1577_v10  ;;  %v711_v48 = vrot.slane %v710_v27, 1 }
 0x142   : > { %v1579_v44 = vpop.eup %1578  ;;  %v800_v62 = vor.u32 1.1754944e-38, %v799_v29  ;;  %vm748_vm9 = vweird.f32 %v2154_v34  ;;  %v747_v51 = vadd.f32 %v1577_v10, %v746_v46  ;;  %vm753_vm10 = vcmp.eq.f32.partialorder %v752_v42, 8.507059e+37 }
 0x143   : > { %v804_v49 = vmul.f32 %v1579_v44, %v2179_v5  ;;  %860 = vperm.xlu0 %1548, %v842_v22   ;;  %v796_v50 = vsel %vm795_vm8, %v1575_v60, %v792_v45  ;;  %v755_v31 = vor.u32 1.1754944e-38, %v754_v43  ;;  %v712_v54 = vadd.f32 %v711_v48, %v710_v27  ;;  %vm750_vm11 = vmor %vm748_vm9, %vm749_vm7  ;;  %v1430_v48 = vld [vmem:[#allocation8 + $0x38] sm:$0xff] }
 0x144   : > { %v1581_v53 = vpop.eup %1580  ;;  %v801_v59 = vsel %vm2204_vm6, %v800_v62, %v796_v50  ;;  %v814_v26 = vand.u32 2147483648, %v2179_v5  ;;  %v751_v6 = vsel %vm750_vm11, %v1577_v10, %v747_v51  ;;  %vm809_vm12 = vweird.f32 %v1579_v44  ;;  %1163 = vmatpush.bf16.msra.mxu2 %v1430_v48 }
 0x145   : > { %v805_v61 = vsub.f32 1.0, %v804_v49  ;;  %v838_v32 = vmul.f32 %v2117_v30, %v801_v59  ;;  %v759_v34 = vmul.f32 %v1581_v53, %v2191_v25  ;;  %1582 = vrcp.f32 %v712_v54  ;;  %v1429_v49 = vld [vmem:[#allocation8 + $0x30] sm:$0xff] }
 0x146   : > { %v756_v60 = vsel %vm753_vm10, %v755_v31, %v751_v6  ;;  %v812_v63 = vand.u32 2147483647, %v2179_v5  ;;  %vm808_vm13 = vweird.f32 %v2179_v5  ;;  %v815_v21 = vor.u32 1.1754944e-38, %v814_v26  ;;  %v1438_v6 = vld [vmem:[#allocation10 + $0x38] sm:$0xff] }
 0x147   : > { %v806_v7 = vmul.f32 %v1579_v44, %v805_v61  ;;  %v846_v11 = vpack.c.bf16 %v838_v32, %v838_v32  ;;  %v835_v16 = vmul.f32 %v2119_v37, %v756_v60  ;;  %v760_v17 = vsub.f32 1.0, %v759_v34  ;;  %vm810_vm14 = vmor %vm808_vm13, %vm809_vm12  ;;  %v1427_v61 = vld [vmem:[#allocation8 + $0x20] sm:$0xff]  ;;  %1102 = vmatpush.bf16.msra.mxu1 %v1438_v6 }
 0x148   : > { %v769_v23 = vand.u32 2147483648, %v2191_v25  ;;  %vm764_vm15 = vweird.f32 %v1581_v53  ;;  %v767_v24 = vand.u32 2147483647, %v2191_v25  ;;  %vm813_vm0 = vcmp.eq.f32.partialorder %v812_v63, 8.507059e+37  ;;  %1164 = vmatpush.bf16.msra.mxu2 %v1429_v49  ;;  %v1426_v63 = vld [vmem:[#allocation8 + $0x18] sm:$0xff] }
 0x149   : > { %v807_v18 = vadd.f32 %v1579_v44, %v806_v7  ;;  %896 = vperm.xlu2 %1549, %v846_v11   ;;  %v843_v30 = vpack.c.bf16 %v835_v16, %v835_v16  ;;  %v761_v10 = vmul.f32 %v1581_v53, %v760_v17  ;;  %vm763_vm4 = vweird.f32 %v2191_v25 }
 0x14a   : > { %vm765_vm5 = vmor %vm763_vm4, %vm764_vm15  ;;  %v770_v55 = vor.u32 1.1754944e-38, %v769_v23  ;;  %vm768_vm6 = vcmp.eq.f32.partialorder %v767_v24, 8.507059e+37  ;;  %v829_v41 = vand.u32 2147483648, %v712_v54  ;;  %v827_v33 = vand.u32 2147483647, %v712_v54  ;;  %v1425_v23 = vld [vmem:[#allocation8 + $0x10] sm:$0xff] }
 0x14b   : > { %v811_v47 = vsel %vm810_vm14, %v1579_v44, %v807_v18  ;;  %869 = vperm.xlu1 %1550, %v843_v30   ;;  %v762_v37 = vadd.f32 %v1581_v53, %v761_v10  ;;  %v1583_v0 = vpop.eup %1582  ;;  %vm823_vm8 = vweird.f32 %v712_v54  ;;  %v1816_v45 = vmov 839922192   ;;  %v1437_v18 = vld [vmem:[#allocation10 + $0x30] sm:$0xff] }
 0x14c   : > { %v816_v28 = vsel %vm813_vm0, %v815_v21, %v811_v47  ;;  %v819_v36 = vmul.f32 %v1583_v0, %v712_v54  ;;  %vm824_vm7 = vweird.f32 %v1583_v0  ;;  %vm828_vm10 = vcmp.eq.f32.partialorder %v827_v33, 8.507059e+37  ;;  %1103 = vmatpush.bf16.msra.mxu1 %v1437_v18  ;;  %v1436_v47 = vld [vmem:[#allocation10 + $0x28] sm:$0xff]  ;;  %v1431_v18 = vld [vmem:[#allocation10] sm:$0xff] }
 0x14d   : > { %v839_v5 = vmul.f32 %v2135_v1, %v816_v28  ;;  %v766_v29 = vsel %vm765_vm5, %v1581_v53, %v762_v37  ;;  %vm825_vm9 = vmor %vm823_vm8, %vm824_vm7  ;;  %v830_v1 = vor.u32 1.1754944e-38, %v829_v41  ;;  %v855_v46 = vunpack.c.l.s4 %v1816_v45  ;;  %v1428_v53 = vld [vmem:[#allocation8 + $0x28] sm:$0xff]  ;;  %v1433_v45 = vld [vmem:[#allocation10 + $0x10] sm:$0xff] }
 0x14e   : > { %v771_v39 = vsel %vm768_vm6, %v770_v55, %v766_v29  ;;  %v820_v57 = vsub.f32 1.0, %v819_v36  ;;  %1165 = vmatpush.bf16.msra.mxu2 %v1428_v53  ;;  %v1435_v55 = vld [vmem:[#allocation10 + $0x20] sm:$0xff]  ;;  %vm1044_vm11 = vcmask 1044484   ;;  %vm1046_vm12 = vcmask 1045509  }
 0x14f   : > { %v847_v38 = vpack.c.bf16 %v839_v5, %v839_v5  ;;  %v836_v40 = vmul.f32 %v2145_v20, %v771_v39  ;;  %v2229_v62 = vunpack.c.0.s8 %v855_v46  ;;  %v1424_v5 = vld [vmem:[#allocation8 + $0x8] sm:$0xff]  ;;  %v1423_v29 = vld [vmem:[#allocation8] sm:$0xff]  ;;  %vm1048_vm13 = vcmask 1046534  }
 0x150   : > { %v821_v27 = vmul.f32 %v1583_v0, %v820_v57  ;;  %1104 = vmatpush.bf16.msra.mxu1 %v1436_v47  ;;  %v1434_v57 = vld [vmem:[#allocation10 + $0x18] sm:$0xff]  ;;  %vm1050_vm14 = vcmask 1047559  }
 0x151   : > { %905 = vperm.xlu0 %1548, %v847_v38   ;;  %v844_v52 = vpack.c.bf16 %v836_v40, %v836_v40 }
 0x152   : > { %v822_v25 = vadd.f32 %v1583_v0, %v821_v27  ;;  %1166 = vmatpush.bf16.msra.mxu2 %v1427_v61 }
 0x153   : > { %878 = vperm.xlu1 %1550, %v844_v52  }
 0x154   : > { %v826_v42 = vsel %vm825_vm9, %v1583_v0, %v822_v25  ;;  %1105 = vmatpush.bf16.msra.mxu1 %v1435_v55  ;;  %v382_v25 = vld [vmem:[%s2023_s29] sm:$0xf] }
 0x155   : > { %v831_v43 = vsel %vm828_vm10, %v830_v1, %v826_v42 }
 0x156   : > { %v840_v44 = vmul.f32 %v2173_v58, %v831_v43  ;;  %1167 = vmatpush.bf16.msra.mxu2 %v1426_v63 }
 0x158   : > { %v848_v22 = vpack.c.bf16 %v840_v44, %v840_v44  ;;  %1106 = vmatpush.bf16.msra.mxu1 %v1434_v57 }
 0x15a   : > { %1168 = vmatpush.bf16.msra.mxu2 %v1425_v23 }
 0x15b   : > { %914 = vperm.xlu1 %1550, %v848_v22  }
 0x15c   : > { %1107 = vmatpush.bf16.msra.mxu1 %v1433_v45 }
 0x15e   : > { %1169 = vmatpush.bf16.msra.mxu2 %v1424_v5 }
 0x162   : > { %1170 = vmatpush.bf16.msra.mxu2 %v1423_v29 }
 0x165   : > { %1171 = vmatmul.bf16.vlgmr.msra.gmra.mxu2 %v382_v25 }
 0x19b   : > { %v888_v20 = vpop.permute.xlu2 %887 }
 0x19c   : > { %v893_v54 = vperm.slane %v888_v20, %v2229_v62 }
 0x19e   : > { %v925_v26 = vunpack.c.l.bf16 %v893_v54 }
 0x1a0   : > { %v933_v11 = vmul.f32 %v1449_v19, %v925_v26 }
 0x1a2   : > { %v941_v30 = vpack.c.bf16 %v933_v11, %v933_v11 }
 0x1a3   : > { %v897_v31 = vpop.permute.xlu2 %896 }
 0x1a4   : > { %v902_v58 = vperm.slane %v897_v31, %v2229_v62  ;;  %v949_v9 = vunpack.c.l.bf16 %v941_v30 }
 0x1a6   : > { %v926_v34 = vunpack.c.l.bf16 %v902_v58  ;;  %v977_v41 = vrot.slane %v949_v9, 4  ;;  %v1432_v58 = vld [vmem:[#allocation10 + $0x8] sm:$0xff] }
 0x1a7   : > { %1108 = vmatpush.bf16.msra.mxu1 %v1432_v58 }
 0x1a8   : > { %v934_v21 = vmul.f32 %v1450_v35, %v926_v34 }
 0x1aa   : > { %v942_v28 = vpack.c.bf16 %v934_v21, %v934_v21 }
 0x1ab   : > { %1109 = vmatpush.bf16.msra.mxu1 %v1431_v18 }
 0x1ac   : > { %v852_v50 = vpop.permute.xlu0 %851  ;;  %v950_v36 = vunpack.c.l.bf16 %v942_v28 }
 0x1ad   : > { %v857_v51 = vperm.slane %v852_v50, %v2229_v62 }
 0x1ae   : > { %v983_v1 = vrot.slane %v950_v36, 4 }
 0x1af   : > { %v921_v59 = vunpack.c.l.bf16 %v857_v51 }
 0x1b0   : > { %v984_v51 = vadd.f32 %v983_v1, %v950_v36 }
 0x1b1   : > { %v929_v32 = vmul.f32 %v1441_v12, %v921_v59 }
 0x1b3   : > { %v937_v16 = vpack.c.bf16 %v929_v32, %v929_v32 }
 0x1b5   : > { %v861_v60 = vpop.permute.xlu0 %860  ;;  %v945_v10 = vunpack.c.l.bf16 %v937_v16 }
 0x1b6   : > { %v866_v7 = vperm.slane %v861_v60, %v2229_v62  ;;  %v985_v60 = vrot.slane %v984_v51, 2 }
 0x1b7   : > { %v953_v35 = vrot.slane %v945_v10, 4 }
 0x1b8   : > { %v922_v17 = vunpack.c.l.bf16 %v866_v7 }
 0x1b9   : > { %v954_v27 = vadd.f32 %v953_v35, %v945_v10  ;;  %v986_v10 = vadd.f32 %v985_v60, %v984_v51 }
 0x1ba   : > { %v930_v12 = vmul.f32 %v1442_v13, %v922_v17 }
 0x1bb   : > { %v955_v48 = vrot.slane %v954_v27, 2 }
 0x1bc   : > { %v938_v24 = vpack.c.bf16 %v930_v12, %v930_v12 }
 0x1bd   : > { %v870_v37 = vpop.permute.xlu1 %869  ;;  %v956_v32 = vadd.f32 %v955_v48, %v954_v27 }
 0x1be   : > { %v946_v19 = vunpack.c.l.bf16 %v938_v24  ;;  %v875_v0 = vperm.slane %v870_v37, %v2229_v62 }
 0x1c0   : > { %v959_v3 = vrot.slane %v946_v19, 4  ;;  %v923_v13 = vunpack.c.l.bf16 %v875_v0 }
 0x1c2   : > { %v960_v38 = vadd.f32 %v959_v3, %v946_v19  ;;  %v931_v39 = vmul.f32 %v1445_v4, %v923_v13  ;;  %v978_v4 = vadd.f32 %v977_v41, %v949_v9  ;;  %v987_v9 = vrot.slane %v986_v10, 1 }
 0x1c3   : > { %v906_v40 = vpop.permute.xlu0 %905 }
 0x1c4   : > { %v911_v52 = vperm.slane %v906_v40, %v2229_v62  ;;  %v939_v33 = vpack.c.bf16 %v931_v39, %v931_v39  ;;  %v961_v44 = vrot.slane %v960_v38, 2  ;;  %v979_v61 = vrot.slane %v978_v4, 2 }
 0x1c5   : > { %v879_v43 = vpop.permute.xlu1 %878  ;;  %v988_v41 = vadd.f32 %v987_v9, %v986_v10 }
 0x1c6   : > { %v927_v42 = vunpack.c.l.bf16 %v911_v52  ;;  %v947_v22 = vunpack.c.l.bf16 %v939_v33  ;;  %v884_v20 = vperm.slane %v879_v43, %v2229_v62  ;;  %v962_v53 = vadd.f32 %v961_v44, %v960_v38 }
 0x1c7   : > { %v980_v21 = vadd.f32 %v979_v61, %v978_v4  ;;  %v1006_v44 = vpack.c.bf16 %v988_v41, %v988_v41 }
 0x1c8   : > { %v935_v46 = vmul.f32 %v1453_v14, %v927_v42  ;;  %v965_v49 = vrot.slane %v947_v22, 4  ;;  %v924_v50 = vunpack.c.l.bf16 %v884_v20  ;;  %v963_v63 = vrot.slane %v962_v53, 1 }
 0x1c9   : > { %v981_v19 = vrot.slane %v980_v21, 1 }
 0x1ca   : > { %v943_v31 = vpack.c.bf16 %v935_v46, %v935_v46  ;;  %v966_v54 = vadd.f32 %v965_v49, %v947_v22  ;;  %v932_v59 = vmul.f32 %v1446_v8, %v924_v50  ;;  %v957_v8 = vrot.slane %v956_v32, 1 }
 0x1cb   : > { %v964_v47 = vadd.f32 %v963_v63, %v962_v53  ;;  %v982_v36 = vadd.f32 %v981_v19, %v980_v21 }
 0x1cc   : > { %v951_v26 = vunpack.c.l.bf16 %v943_v31  ;;  %v967_v6 = vrot.slane %v966_v54, 2  ;;  %v940_v34 = vpack.c.bf16 %v932_v59, %v932_v59  ;;  %v958_v5 = vadd.f32 %v957_v8, %v956_v32 }
 0x1cd   : > { %v915_v7 = vpop.permute.xlu1 %914  ;;  %v1002_v3 = vpack.c.bf16 %v964_v47, %v964_v47  ;;  %v1005_v33 = vpack.c.bf16 %v982_v36, %v982_v36 }
 0x1ce   : > { %v989_v14 = vrot.slane %v951_v26, 4  ;;  %v968_v11 = vadd.f32 %v967_v6, %v966_v54  ;;  %v948_v16 = vunpack.c.l.bf16 %v940_v34  ;;  %v920_v17 = vperm.slane %v915_v7, %v2229_v62  ;;  %v1551_v7 = vld [vmem:[%s2301_s5] ss:$0 sm:$0xff] }
 0x1cf   : > { %v1001_v39 = vpack.c.bf16 %v958_v5, %v958_v5  ;;  %v1034_v2 = vunpack.c.l.b16 %v1002_v3  ;;  %v1037_v46 = vunpack.c.l.b16 %v1005_v33  ;;  %v1038_v54 = vunpack.c.l.b16 %v1006_v44 }
 0x1d0   : > { %v990_v56 = vadd.f32 %v989_v14, %v951_v26  ;;  %v969_v12 = vrot.slane %v968_v11, 1  ;;  %v971_v23 = vrot.slane %v948_v16, 4  ;;  %v928_v30 = vunpack.c.l.bf16 %v920_v17 }
 0x1d1   : > { %v1033_v1 = vunpack.c.l.b16 %v1001_v39 }
 0x1d2   : > { %v991_v24 = vrot.slane %v990_v56, 2  ;;  %v972_v28 = vadd.f32 %v971_v23, %v948_v16  ;;  %v936_v37 = vmul.f32 %v1454_v15, %v928_v30  ;;  %v970_v0 = vadd.f32 %v969_v12, %v968_v11 }
 0x1d3   : > { %v1041_v4 = vsel %vm415_vm2, %v1034_v2, %v1033_v1 }
 0x1d4   : > { %v973_v62 = vrot.slane %v972_v28, 2  ;;  %v944_v55 = vpack.c.bf16 %v936_v37, %v936_v37  ;;  %v992_v35 = vadd.f32 %v991_v24, %v990_v56  ;;  %v1003_v38 = vpack.c.bf16 %v970_v0, %v970_v0 }
 0x1d6   : > { %v974_v13 = vadd.f32 %v973_v62, %v972_v28  ;;  %v952_v29 = vunpack.c.l.bf16 %v944_v55  ;;  %v993_v52 = vrot.slane %v992_v35, 1  ;;  %v1035_v25 = vunpack.c.l.b16 %v1003_v38 }
 0x1d8   : > { %v975_v40 = vrot.slane %v974_v13, 1  ;;  %v995_v57 = vrot.slane %v952_v29, 4  ;;  %v994_v22 = vadd.f32 %v993_v52, %v992_v35  ;;  %v1042_v48 = vsel %vm419_vm1, %v1035_v25, %v1041_v4 }
 0x1da   : > { %v976_v15 = vadd.f32 %v975_v40, %v974_v13  ;;  %v996_v27 = vadd.f32 %v995_v57, %v952_v29  ;;  %v1007_v51 = vpack.c.bf16 %v994_v22, %v994_v22 }
 0x1dc   : > { %v1004_v42 = vpack.c.bf16 %v976_v15, %v976_v15  ;;  %v997_v43 = vrot.slane %v996_v27, 2  ;;  %v1039_v61 = vunpack.c.l.b16 %v1007_v51 }
 0x1de   : > { %v1036_v20 = vunpack.c.l.b16 %v1004_v42  ;;  %v998_v45 = vadd.f32 %v997_v43, %v996_v27 }
 0x1e0   : > { %v999_v49 = vrot.slane %v998_v45, 1  ;;  %v1043_v50 = vsel %vm423_vm3, %v1036_v20, %v1042_v48 }
 0x1e1   : > { %v1045_v31 = vsel %vm1044_vm11, %v1037_v46, %v1043_v50 }
 0x1e2   : > { %v1000_v53 = vadd.f32 %v999_v49, %v998_v45  ;;  %v1047_v58 = vsel %vm1046_vm12, %v1038_v54, %v1045_v31 }
 0x1e3   : > { %v1049_v32 = vsel %vm1048_vm13, %v1039_v61, %v1047_v58 }
 0x1e4   : > { %v1008_v59 = vpack.c.bf16 %v1000_v53, %v1000_v53 }
 0x1e6   : > { %v1040_v26 = vunpack.c.l.b16 %v1008_v59 }
 0x1e8   : > { %v1051_v6 = vsel %vm1050_vm14, %v1040_v26, %v1049_v32  ;;  %v1172_v60 = vpop.f32.mrf.mxu2 }
 0x1e9   : > { %v1052_v34 = vpack.c.b16 %v1051_v6, %v1051_v6 }
 0x1eb   : > { %1110 = vmatmul.bf16.vlgmr.msra.gmra.mxu1 %v1052_v34 }
 0x1f0   : > { %v1174_v14 = vpop.f32.mrf.mxu2 }
 0x268   : > { %v1111_v63 = vpop.f32.mrf.mxu1 }
 0x269   : > { %v1173_v11 = vadd.f32 %v1172_v60, %v1111_v63 }
 0x26b   : > { %v1180_v16 = vadd.f32 %v1551_v7, %v1173_v11 }
 0x26d   : > { %v1181_v17 = vmax.f32 %v1180_v16, 0.0 }
 0x26f   : > { %1182 = vst [vmem:[%s379_s20] sm:$0xff] %v1181_v17 }
 0x270   : > { %v1113_v18 = vpop.f32.mrf.mxu1 }
 0x271   : > { %1761 = shalt.err (!%p1758_p2)
}
 0x272   : > { %1480 = dma.vmem_to_hbm [thread:$0]  (%p1928_p7), %s1197_s3, 128, %s1199_s1, %s1184_s25  }
 0x273 PF: > { %s1210_s26 = sand.u32 1, %s1796_s21   ;;  %p2339_p10 = scmp.ge.s32.totalorder %s1808_s24, 2 }
 0x274   : > { %s1211_s19 = scalar_lea.sflag [#allocation4], %s1210_s26 }
 0x275   : > { %p1500_p13 = pnand %p2339_p10, %p1887_p6 }
 0x277   : > { %p1501_p0 = pneg %p1500_p13 }
 0x279   : > { %1791 = dma.done.wait (%p1501_p0), %s1211_s19, 128  }
 0x27a   : > { %1793 = vsyncadd (%p1501_p0), %s1211_s19, 4294967168  ;;  %s2340_s24 = sld [smem:[#allocation18_spill]]  ;;  %s2343_s21 = smov %s1800_s22 }
 0x27b   : > { %s2341_s29 = sld [smem:[#allocation16_spill]] }
 0x27c   : > { %s2342_s23 = sld [smem:[#allocation19_spill]] }
 0x280   : > { %p23_p8 = scmp.ge.s32.totalorder %s2340_s24, 4  }
 0x281   : > { %s2344_s22 = smov %s2341_s29 }
 0x282   :  { %25 = sbr.rel (!%p23_p8) target bundleno = 11 (0xb), region = 121 }
 0x287   :  { %1217 = vsyncpa [#allocation3], 1 }
 0x288   :  { %1219 = vsyncpa [#allocation3 + $0x1], 1 }
 0x289   :  { %1220 = vsyncpa [#allocation6], 1 }
 0x28a   :  { %1222 = vsyncpa [#allocation6 + $0x1], 1 }
 0x28b   :  { %1223 = vsyncpa [#allocation9], 1 }
 0x28c   :  { %1224 = vsyncpa [#allocation4], 1 }
 0x28d   :  { %1226 = vsyncpa [#allocation4 + $0x1], 1 }

</bundles_post_ra>
